<compile_context>
chip_gen: v6e
topology: v6e:2x2x1
jax: 0.10.0
libtpu: 0.0.40
codegen_flags: <defaults>
</compile_context>

<pallas_src>
import jax
import jax.numpy as jnp
from jax.experimental import pallas as pl
from jax.experimental.pallas import tpu as pltpu

NOTE_SIZE = 96
OFF_SIZE = 32
HIDDEN = NOTE_SIZE + OFF_SIZE   # 128 -> exactly one lane group
NOTE_NUM = 32
BATCH = 8
SEQ_LEN = 16

ATOL = 5e-2   # bf16 weights/activations vs pure-f32 reference (accumulates over T steps)
RTOL = 5e-2


# ---------------------------------------------------------------------------
# Kernel: runs the full T-step recurrence; weights resident, h/c in scratch.
# ---------------------------------------------------------------------------
def _piano_seq_kernel(x_ref, h0_ref, c0_ref,
                      w_in_ref, w_hh_ref, b_lstm_ref,
                      w_head_ref, b_head_ref,
                      out_ref, h_scr, c_scr):
    H = HIDDEN
    t = pl.program_id(0)

    @pl.when(t == 0)
    def _():
        h_scr[...] = h0_ref[...]
        c_scr[...] = c0_ref[...]

    x = x_ref[0]                       # (B, 128) bf16: [emb(96) | off(1) | zeros(31)]
    h = h_scr[...]                     # (B, 128) f32
    c = c_scr[...]                     # (B, 128) f32

    # LSTMCell gates.  offset_vec Linear(1,32) is folded into w_in (row 96) and
    # b_lstm, so x @ w_in already contains embs@Wih_note + off*fused_row.
    gates = (
        jnp.dot(x, w_in_ref[...], preferred_element_type=jnp.float32)
        + jnp.dot(h.astype(jnp.bfloat16), w_hh_ref[...],
                  preferred_element_type=jnp.float32)
        + b_lstm_ref[...]
    )                                  # (B, 4H) f32

    i_g = jax.nn.sigmoid(gates[:, 0 * H:1 * H])
    f_g = jax.nn.sigmoid(gates[:, 1 * H:2 * H])
    g_g = jnp.tanh(gates[:, 2 * H:3 * H])
    o_g = jax.nn.sigmoid(gates[:, 3 * H:4 * H])

    c_new = f_g * c + i_g * g_g
    h_new = o_g * jnp.tanh(c_new)
    h_scr[...] = h_new
    c_scr[...] = c_new

    # Fused output heads: columns [0:96] = note_emb, [96] = offset pre-relu,
    # [97:128] = zero padding.  ReLU applies only to lanes >= NOTE_SIZE
    # (padding lanes are exactly 0, so relu is a no-op there).
    head = jnp.dot(h_new.astype(jnp.bfloat16), w_head_ref[...],
                   preferred_element_type=jnp.float32) + b_head_ref[...]   # (B, 128)
    lane = jax.lax.broadcasted_iota(jnp.int32, head.shape, 1)
    head = jnp.where(lane >= NOTE_SIZE, jnp.maximum(head, 0.0), head)

    # Lane-dense packed output slab: [head(128) | ho(128) | co(128)].
    out_ref[0] = jnp.concatenate([head, h_new, c_new], axis=-1)


# ---------------------------------------------------------------------------
# Parameter init (matches PyTorch module's layer shapes / init ranges).
# ---------------------------------------------------------------------------
def init_params(key, note_size=NOTE_SIZE, off_size=OFF_SIZE, note_num=NOTE_NUM):
    hidden = note_size + off_size
    keys = jax.random.split(key, 16)

    def lin(kw, kb, out_f, in_f):
        bound = 1.0 / float(in_f) ** 0.5
        w = jax.random.uniform(kw, (out_f, in_f), jnp.float32, -bound, bound)
        b = jax.random.uniform(kb, (out_f,), jnp.float32, -bound, bound)
        return w, b

    k = 1.0 / float(hidden) ** 0.5
    p = {}
    p['w_ih'] = jax.random.uniform(keys[0], (4 * hidden, hidden), jnp.float32, -k, k)
    p['w_hh'] = jax.random.uniform(keys[1], (4 * hidden, hidden), jnp.float32, -k, k)
    p['b_ih'] = jax.random.uniform(keys[2], (4 * hidden,), jnp.float32, -k, k)
    p['b_hh'] = jax.random.uniform(keys[3], (4 * hidden,), jnp.float32, -k, k)
    p['w_nl'], p['b_nl'] = lin(keys[4], keys[5], note_size, hidden)     # note_linear
    p['w_nh'], p['b_nh'] = lin(keys[6], keys[7], hidden, hidden)        # note_hidden
    p['w_oh'], p['b_oh'] = lin(keys[8], keys[9], hidden, hidden)        # offset_hidden
    p['w_or'], p['b_or'] = lin(keys[10], keys[11], 1, hidden)           # offset_reg
    p['w_ov'], p['b_ov'] = lin(keys[12], keys[13], off_size, 1)         # offset_vec
    p['emb'] = jax.random.normal(keys[14], (note_num, note_size), jnp.float32)
    return p


# ---------------------------------------------------------------------------
# One-time parameter preparation: transposes, algebraic fusions, padding, bf16.
# ---------------------------------------------------------------------------
def prepare_params(params):
    wih_t = params['w_ih'].T                          # (128, 512)
    wih_note_t = wih_t[:NOTE_SIZE]                    # (96, 512)
    wih_off_t = wih_t[NOTE_SIZE:]                     # (32, 512)

    # Fold offset_vec Linear(1,32) into the input weight / bias.
    fused_off_row = params['w_ov'].T @ wih_off_t      # (1, 512)
    w_in = jnp.zeros((HIDDEN, 4 * HIDDEN), jnp.float32)
    w_in = w_in.at[:NOTE_SIZE].set(wih_note_t)
    w_in = w_in.at[NOTE_SIZE].set(fused_off_row[0])   # row 96 multiplies the offset lane
    b_lstm = (params['b_ih'] + params['b_hh']
              + params['b_ov'] @ wih_off_t).reshape(1, -1)          # (1, 512)

    # Collapse the two activation-free output heads into one (128,128) matmul.
    w_note = params['w_nh'].T @ params['w_nl'].T                     # (128, 96)
    b_note = params['b_nh'] @ params['w_nl'].T + params['b_nl']      # (96,)
    w_off = params['w_oh'].T @ params['w_or'].T                      # (128, 1)
    b_off = params['b_oh'] @ params['w_or'].T + params['b_or']       # (1,)
    w_head = jnp.pad(jnp.concatenate([w_note, w_off], axis=1),
                     ((0, 0), (0, HIDDEN - NOTE_SIZE - 1)))          # (128, 128)
    b_head = jnp.pad(jnp.concatenate([b_note, b_off]),
                     (0, HIDDEN - NOTE_SIZE - 1)).reshape(1, -1)     # (1, 128)

    emb_pad = jnp.pad(params['emb'], ((0, 0), (0, HIDDEN - NOTE_SIZE)))  # (32, 128)

    return {
        'w_in': w_in.astype(jnp.bfloat16),
        'w_hh': params['w_hh'].T.astype(jnp.bfloat16),
        'b_lstm': b_lstm,                                  # f32
        'w_head': w_head.astype(jnp.bfloat16),
        'b_head': b_head,                                  # f32
        'emb_pad': emb_pad,                                # f32 (cast after off insert)
    }


# ---------------------------------------------------------------------------
# Wrappers
# ---------------------------------------------------------------------------
def piano_cell_sequence(prepared, note_seq, off_seq, hc=None):
    """Run T PianoCell steps in one pallas_call. note_seq/off_seq: (T, B)."""
    T, B = note_seq.shape
    if hc is None:
        h0 = jnp.zeros((B, HIDDEN), jnp.float32)
        c0 = jnp.zeros((B, HIDDEN), jnp.float32)
    else:
        h0, c0 = hc
        h0 = h0.astype(jnp.float32)
        c0 = c0.astype(jnp.float32)

    # Glue (plain JAX, once per sequence): embedding gather + pack offset scalar
    # into lane NOTE_SIZE of the K=128-padded input.
    x_seq = prepared['emb_pad'][note_seq]                            # (T, B, 128) f32
    x_seq = x_seq.at[:, :, NOTE_SIZE].set(off_seq.astype(jnp.float32))
    x_seq = x_seq.astype(jnp.bfloat16)

    seq3 = lambda t: (t, 0, 0)
    const2 = lambda t: (0, 0)

    out = pl.pallas_call(
        _piano_seq_kernel,
        out_shape=jax.ShapeDtypeStruct((T, B, 3 * HIDDEN), jnp.float32),
        grid_spec=pltpu.PrefetchScalarGridSpec(
            num_scalar_prefetch=0,
            grid=(T,),
            in_specs=[
                pl.BlockSpec((1, B, HIDDEN), seq3),            # x_seq (streamed per step)
                pl.BlockSpec((B, HIDDEN), const2),             # h0 (resident)
                pl.BlockSpec((B, HIDDEN), const2),             # c0 (resident)
                pl.BlockSpec((HIDDEN, 4 * HIDDEN), const2),    # w_in (resident)
                pl.BlockSpec((HIDDEN, 4 * HIDDEN), const2),    # w_hh (resident)
                pl.BlockSpec((1, 4 * HIDDEN), const2),         # b_lstm (resident)
                pl.BlockSpec((HIDDEN, HIDDEN), const2),        # w_head (resident)
                pl.BlockSpec((1, HIDDEN), const2),             # b_head (resident)
            ],
            out_specs=pl.BlockSpec((1, B, 3 * HIDDEN), seq3),
            scratch_shapes=[pltpu.VMEM((B, HIDDEN), jnp.float32),   # h carry
                            pltpu.VMEM((B, HIDDEN), jnp.float32)],  # c carry
        ),
        compiler_params=pltpu.CompilerParams(
            dimension_semantics=("arbitrary",)),   # time axis is a recurrence
    )(x_seq, h0, c0,
      prepared['w_in'], prepared['w_hh'], prepared['b_lstm'],
      prepared['w_head'], prepared['b_head'])

    note_emb = out[:, :, :NOTE_SIZE]                # (T, B, 96)
    off_reg = out[:, :, NOTE_SIZE]                  # (T, B)
    ho = out[:, :, HIDDEN:2 * HIDDEN]               # (T, B, 128)
    co = out[:, :, 2 * HIDDEN:3 * HIDDEN]           # (T, B, 128)
    return note_emb, off_reg, (ho, co)


def piano_cell_forward(prepared, note_inputs, off_inputs, hc=None):
    """Single-step forward, matching PianoCell.forward semantics."""
    note_emb, off_reg, (ho, co) = piano_cell_sequence(
        prepared, note_inputs[None, :], off_inputs[None, :], hc)
    return note_emb[0], off_reg[0], (ho[0], co[0])


# ---------------------------------------------------------------------------
# Pure-JAX f32 reference (PyTorch PianoCell.forward semantics, one step).
# ---------------------------------------------------------------------------
def reference_step(params, note_inputs, off_inputs, h, c):
    off_col = off_inputs.reshape(-1, 1).astype(jnp.float32)
    off_vec = off_col @ params['w_ov'].T + params['b_ov']
    embs = params['emb'][note_inputs]
    x = jnp.concatenate([embs, off_vec], axis=-1)
    gates = (x @ params['w_ih'].T + params['b_ih']
             + h @ params['w_hh'].T + params['b_hh'])
    i_g, f_g, g_g, o_g = jnp.split(gates, 4, axis=-1)
    i_g = jax.nn.sigmoid(i_g)
    f_g = jax.nn.sigmoid(f_g)
    g_g = jnp.tanh(g_g)
    o_g = jax.nn.sigmoid(o_g)
    c_new = f_g * c + i_g * g_g
    h_new = o_g * jnp.tanh(c_new)
    note_emb = (h_new @ params['w_nh'].T + params['b_nh']) @ params['w_nl'].T + params['b_nl']
    off_reg = jax.nn.relu(
        (h_new @ params['w_oh'].T + params['b_oh']) @ params['w_or'].T + params['b_or'])
    return note_emb, off_reg.reshape(-1), h_new, c_new


if __name__ == "__main__":
    key = jax.random.PRNGKey(0)
    kp, kn, ko, kh, kc = jax.random.split(key, 5)

    params = init_params(kp)
    prepared = prepare_params(params)

    note_seq = jax.random.randint(kn, (SEQ_LEN, BATCH), 0, NOTE_NUM, dtype=jnp.int32)
    off_seq = jax.random.uniform(ko, (SEQ_LEN, BATCH), jnp.float32)

    # --- full-sequence kernel (zero initial state) ---
    note_emb, off_reg, (ho_seq, co_seq) = piano_cell_sequence(prepared, note_seq, off_seq)
    jax.block_until_ready((note_emb, off_reg, ho_seq, co_seq))

    # reference: unrolled f32 loop
    h = jnp.zeros((BATCH, HIDDEN), jnp.float32)
    c = jnp.zeros((BATCH, HIDDEN), jnp.float32)
    r_ne, r_or, r_h, r_c = [], [], [], []
    for t in range(SEQ_LEN):
        ne, orr, h, c = reference_step(params, note_seq[t], off_seq[t], h, c)
        r_ne.append(ne); r_or.append(orr); r_h.append(h); r_c.append(c)
    r_ne = jnp.stack(r_ne); r_or = jnp.stack(r_or)
    r_h = jnp.stack(r_h); r_c = jnp.stack(r_c)

    assert jnp.allclose(note_emb, r_ne, atol=ATOL, rtol=RTOL)
    assert jnp.allclose(off_reg, r_or, atol=ATOL, rtol=RTOL)
    assert jnp.allclose(ho_seq, r_h, atol=ATOL, rtol=RTOL)
    assert jnp.allclose(co_seq, r_c, atol=ATOL, rtol=RTOL)

    # --- single-step forward (module semantics) with a non-zero hidden state ---
    h0 = 0.1 * jax.random.normal(kh, (BATCH, HIDDEN), jnp.float32)
    c0 = 0.1 * jax.random.normal(kc, (BATCH, HIDDEN), jnp.float32)
    ne1, or1, (h1, c1) = piano_cell_forward(prepared, note_seq[0], off_seq[0], (h0, c0))
    jax.block_until_ready((ne1, or1, h1, c1))
    rne1, ror1, rh1, rc1 = reference_step(params, note_seq[0], off_seq[0], h0, c0)

    assert jnp.allclose(ne1, rne1, atol=ATOL, rtol=RTOL)
    assert jnp.allclose(or1, ror1, atol=ATOL, rtol=RTOL)
    assert jnp.allclose(h1, rh1, atol=ATOL, rtol=RTOL)
    assert jnp.allclose(c1, rc1, atol=ATOL, rtol=RTOL)

    print("KERNEL_OK")
</pallas_src>

<mosaic_0001>
module attributes {stable_mosaic.version = 11 : i64} {
  func.func @_piano_seq_kernel(%arg0: i32, %arg1: memref<1x8x128xbf16, #tpu.memory_space<vmem>>, %arg2: memref<8x128xf32, #tpu.memory_space<vmem>>, %arg3: memref<8x128xf32, #tpu.memory_space<vmem>>, %arg4: memref<128x512xbf16, #tpu.memory_space<vmem>>, %arg5: memref<128x512xbf16, #tpu.memory_space<vmem>>, %arg6: memref<1x512xf32, #tpu.memory_space<vmem>>, %arg7: memref<128x128xbf16, #tpu.memory_space<vmem>>, %arg8: memref<1x128xf32, #tpu.memory_space<vmem>>, %arg9: memref<1x8x384xf32, #tpu.memory_space<vmem>>, %arg10: memref<8x128xf32, #tpu.memory_space<vmem>>, %arg11: memref<8x128xf32, #tpu.memory_space<vmem>>) attributes {dimension_semantics = [#tpu.dimension_semantics<arbitrary>], iteration_bounds = array<i64: 16>, scalar_prefetch = 0 : i64, scratch_operands = 2 : i64, tpu.core_type = #tpu.core_type<tc>, window_params = [{transform_indices = @transform_0, window_bounds = array<i64: 1, 8, 128>}, {pipeline_mode = #tpu.pipeline_mode<synchronous>, transform_indices = @transform_1, window_bounds = array<i64: 8, 128>}, {pipeline_mode = #tpu.pipeline_mode<synchronous>, transform_indices = @transform_2, window_bounds = array<i64: 8, 128>}, {pipeline_mode = #tpu.pipeline_mode<synchronous>, transform_indices = @transform_3, window_bounds = array<i64: 128, 512>}, {pipeline_mode = #tpu.pipeline_mode<synchronous>, transform_indices = @transform_4, window_bounds = array<i64: 128, 512>}, {pipeline_mode = #tpu.pipeline_mode<synchronous>, transform_indices = @transform_5, window_bounds = array<i64: 1, 512>}, {pipeline_mode = #tpu.pipeline_mode<synchronous>, transform_indices = @transform_6, window_bounds = array<i64: 128, 128>}, {pipeline_mode = #tpu.pipeline_mode<synchronous>, transform_indices = @transform_7, window_bounds = array<i64: 1, 128>}, {transform_indices = @transform_8, window_bounds = array<i64: 1, 8, 384>}]} {
    %c0_i32 = arith.constant 0 : i32
    %0 = arith.cmpi eq, %arg0, %c0_i32 : i32
    %1 = arith.extui %0 : i1 to i32
    %c0_i32_0 = arith.constant 0 : i32
    %2 = arith.cmpi ne, %1, %c0_i32_0 : i32
    scf.if %2 {
      %c0_30 = arith.constant 0 : index
      %c0_31 = arith.constant 0 : index
      %59 = vector.load %arg2[%c0_30, %c0_31] : memref<8x128xf32, #tpu.memory_space<vmem>>, vector<8x128xf32>
      %c0_32 = arith.constant 0 : index
      %c0_33 = arith.constant 0 : index
      %60 = vector.load %arg10[%c0_32, %c0_33] : memref<8x128xf32, #tpu.memory_space<vmem>>, vector<8x128xf32>
      tpu.vector_store %arg10[%c0_32, %c0_33], %59 {strides = array<i32>} : memref<8x128xf32, #tpu.memory_space<vmem>>, vector<8x128xf32>,
      %c0_34 = arith.constant 0 : index
      %c0_35 = arith.constant 0 : index
      %61 = vector.load %arg3[%c0_34, %c0_35] : memref<8x128xf32, #tpu.memory_space<vmem>>, vector<8x128xf32>
      %c0_36 = arith.constant 0 : index
      %c0_37 = arith.constant 0 : index
      %62 = vector.load %arg11[%c0_36, %c0_37] : memref<8x128xf32, #tpu.memory_space<vmem>>, vector<8x128xf32>
      tpu.vector_store %arg11[%c0_36, %c0_37], %61 {strides = array<i32>} : memref<8x128xf32, #tpu.memory_space<vmem>>, vector<8x128xf32>,
    } else {
    }
    %c0 = arith.constant 0 : index
    %c0_1 = arith.constant 0 : index
    %c0_2 = arith.constant 0 : index
    %3 = vector.load %arg1[%c0, %c0_1, %c0_2] : memref<1x8x128xbf16, #tpu.memory_space<vmem>>, vector<1x8x128xbf16>
    %4 = vector.shape_cast %3 : vector<1x8x128xbf16> to vector<8x128xbf16>
    %c0_3 = arith.constant 0 : index
    %c0_4 = arith.constant 0 : index
    %5 = vector.load %arg10[%c0_3, %c0_4] : memref<8x128xf32, #tpu.memory_space<vmem>>, vector<8x128xf32>
    %c0_5 = arith.constant 0 : index
    %c0_6 = arith.constant 0 : index
    %6 = vector.load %arg11[%c0_5, %c0_6] : memref<8x128xf32, #tpu.memory_space<vmem>>, vector<8x128xf32>
    %c0_7 = arith.constant 0 : index
    %c0_8 = arith.constant 0 : index
    %7 = vector.load %arg4[%c0_7, %c0_8] : memref<128x512xbf16, #tpu.memory_space<vmem>>, vector<128x512xbf16>
    %cst = arith.constant dense<0.000000e+00> : vector<8x512xf32>
    %8 = tpu.matmul %4, %7, %cst {dimension_numbers = #tpu.dot_dimension_numbers<[1], [0], [0], [1], [0, 0, 1, 1], [], []>} : vector<8x128xbf16>, vector<128x512xbf16>, vector<8x512xf32> -> vector<8x512xf32>
    %9 = arith.truncf %5 : vector<8x128xf32> to vector<8x128xbf16>
    %c0_9 = arith.constant 0 : index
    %c0_10 = arith.constant 0 : index
    %10 = vector.load %arg5[%c0_9, %c0_10] : memref<128x512xbf16, #tpu.memory_space<vmem>>, vector<128x512xbf16>
    %cst_11 = arith.constant dense<0.000000e+00> : vector<8x512xf32>
    %11 = tpu.matmul %9, %10, %cst_11 {dimension_numbers = #tpu.dot_dimension_numbers<[1], [0], [0], [1], [0, 0, 1, 1], [], []>} : vector<8x128xbf16>, vector<128x512xbf16>, vector<8x512xf32> -> vector<8x512xf32>
    %12 = arith.addf %8, %11 : vector<8x512xf32>
    %c0_12 = arith.constant 0 : index
    %c0_13 = arith.constant 0 : index
    %13 = vector.load %arg6[%c0_12, %c0_13] : memref<1x512xf32, #tpu.memory_space<vmem>>, vector<1x512xf32>
    %14 = vector.broadcast %13 : vector<1x512xf32> to vector<8x512xf32>
    %15 = arith.addf %12, %14 : vector<8x512xf32>
    %16 = vector.extract_strided_slice %15 {offsets = [0, 0], sizes = [8, 128], strides = [1, 1]} : vector<8x512xf32> to vector<8x128xf32>
    %17 = arith.negf %16 : vector<8x128xf32>
    %18 = math.exp %17 : vector<8x128xf32>
    %cst_14 = arith.constant 1.000000e+00 : f32
    %19 = vector.broadcast %cst_14 : f32 to vector<8x128xf32>
    %20 = arith.addf %19, %18 : vector<8x128xf32>
    %21 = arith.divf %19, %20 : vector<8x128xf32>
    %22 = vector.extract_strided_slice %15 {offsets = [0, 128], sizes = [8, 128], strides = [1, 1]} : vector<8x512xf32> to vector<8x128xf32>
    %23 = arith.negf %22 : vector<8x128xf32>
    %24 = math.exp %23 : vector<8x128xf32>
    %cst_15 = arith.constant 1.000000e+00 : f32
    %25 = vector.broadcast %cst_15 : f32 to vector<8x128xf32>
    %26 = arith.addf %25, %24 : vector<8x128xf32>
    %27 = arith.divf %25, %26 : vector<8x128xf32>
    %28 = vector.extract_strided_slice %15 {offsets = [0, 256], sizes = [8, 128], strides = [1, 1]} : vector<8x512xf32> to vector<8x128xf32>
    %29 = math.tanh %28 : vector<8x128xf32>
    %30 = vector.extract_strided_slice %15 {offsets = [0, 384], sizes = [8, 128], strides = [1, 1]} : vector<8x512xf32> to vector<8x128xf32>
    %31 = arith.negf %30 : vector<8x128xf32>
    %32 = math.exp %31 : vector<8x128xf32>
    %cst_16 = arith.constant 1.000000e+00 : f32
    %33 = vector.broadcast %cst_16 : f32 to vector<8x128xf32>
    %34 = arith.addf %33, %32 : vector<8x128xf32>
    %35 = arith.divf %33, %34 : vector<8x128xf32>
    %36 = arith.mulf %27, %6 : vector<8x128xf32>
    %37 = arith.mulf %21, %29 : vector<8x128xf32>
    %38 = arith.addf %36, %37 : vector<8x128xf32>
    %39 = math.tanh %38 : vector<8x128xf32>
    %40 = arith.mulf %35, %39 : vector<8x128xf32>
    %c0_17 = arith.constant 0 : index
    %c0_18 = arith.constant 0 : index
    %41 = vector.load %arg10[%c0_17, %c0_18] : memref<8x128xf32, #tpu.memory_space<vmem>>, vector<8x128xf32>
    tpu.vector_store %arg10[%c0_17, %c0_18], %40 {strides = array<i32>} : memref<8x128xf32, #tpu.memory_space<vmem>>, vector<8x128xf32>,
    %c0_19 = arith.constant 0 : index
    %c0_20 = arith.constant 0 : index
    %42 = vector.load %arg11[%c0_19, %c0_20] : memref<8x128xf32, #tpu.memory_space<vmem>>, vector<8x128xf32>
    tpu.vector_store %arg11[%c0_19, %c0_20], %38 {strides = array<i32>} : memref<8x128xf32, #tpu.memory_space<vmem>>, vector<8x128xf32>,
    %43 = arith.truncf %40 : vector<8x128xf32> to vector<8x128xbf16>
    %c0_21 = arith.constant 0 : index
    %c0_22 = arith.constant 0 : index
    %44 = vector.load %arg7[%c0_21, %c0_22] : memref<128x128xbf16, #tpu.memory_space<vmem>>, vector<128x128xbf16>
    %cst_23 = arith.constant dense<0.000000e+00> : vector<8x128xf32>
    %45 = tpu.matmul %43, %44, %cst_23 {dimension_numbers = #tpu.dot_dimension_numbers<[1], [0], [0], [1], [0, 0, 1, 1], [], []>} : vector<8x128xbf16>, vector<128x128xbf16>, vector<8x128xf32> -> vector<8x128xf32>
    %c0_24 = arith.constant 0 : index
    %c0_25 = arith.constant 0 : index
    %46 = vector.load %arg8[%c0_24, %c0_25] : memref<1x128xf32, #tpu.memory_space<vmem>>, vector<1x128xf32>
    %47 = vector.broadcast %46 : vector<1x128xf32> to vector<8x128xf32>
    %48 = arith.addf %45, %47 : vector<8x128xf32>
    %49 = tpu.iota {dimensions = array<i32: 1>} : vector<8x128xi32>
    %c96_i32 = arith.constant 96 : i32
    %50 = vector.broadcast %c96_i32 : i32 to vector<8x128xi32>
    %51 = arith.cmpi sge, %49, %50 : vector<8x128xi32>
    %cst_26 = arith.constant 0.000000e+00 : f32
    %52 = vector.broadcast %cst_26 : f32 to vector<8x128xf32>
    %53 = arith.maximumf %48, %52 : vector<8x128xf32>
    %54 = arith.select %51, %53, %48 : vector<8x128xi1>, vector<8x128xf32>
    %55 = tpu.concatenate %54, %40, %38 in 1 : vector<8x128xf32>, vector<8x128xf32>, vector<8x128xf32> -> vector<8x384xf32>
    %c0_27 = arith.constant 0 : index
    %c0_28 = arith.constant 0 : index
    %c0_29 = arith.constant 0 : index
    %56 = vector.load %arg9[%c0_27, %c0_28, %c0_29] : memref<1x8x384xf32, #tpu.memory_space<vmem>>, vector<1x8x384xf32>
    %57 = vector.shape_cast %56 : vector<1x8x384xf32> to vector<8x384xf32>
    %58 = vector.shape_cast %55 : vector<8x384xf32> to vector<1x8x384xf32>
    tpu.vector_store %arg9[%c0_27, %c0_28, %c0_29], %58 {strides = array<i32>} : memref<1x8x384xf32, #tpu.memory_space<vmem>>, vector<1x8x384xf32>,
    return
  }
  func.func @transform_0(%arg0: i32) -> (i32, i32, i32) {
    %c0_i32 = arith.constant 0 : i32
    %c0_i32_0 = arith.constant 0 : i32
    %c0_i32_1 = arith.constant 0 : i32
    return %arg0, %c0_i32, %c0_i32_0 : i32, i32, i32
  }
  func.func @transform_1(%arg0: i32) -> (i32, i32) {
    %c0_i32 = arith.constant 0 : i32
    %c0_i32_0 = arith.constant 0 : i32
    %c0_i32_1 = arith.constant 0 : i32
    return %c0_i32, %c0_i32_0 : i32, i32
  }
  func.func @transform_2(%arg0: i32) -> (i32, i32) {
    %c0_i32 = arith.constant 0 : i32
    %c0_i32_0 = arith.constant 0 : i32
    %c0_i32_1 = arith.constant 0 : i32
    return %c0_i32, %c0_i32_0 : i32, i32
  }
  func.func @transform_3(%arg0: i32) -> (i32, i32) {
    %c0_i32 = arith.constant 0 : i32
    %c0_i32_0 = arith.constant 0 : i32
    %c0_i32_1 = arith.constant 0 : i32
    return %c0_i32, %c0_i32_0 : i32, i32
  }
  func.func @transform_4(%arg0: i32) -> (i32, i32) {
    %c0_i32 = arith.constant 0 : i32
    %c0_i32_0 = arith.constant 0 : i32
    %c0_i32_1 = arith.constant 0 : i32
    return %c0_i32, %c0_i32_0 : i32, i32
  }
  func.func @transform_5(%arg0: i32) -> (i32, i32) {
    %c0_i32 = arith.constant 0 : i32
    %c0_i32_0 = arith.constant 0 : i32
    %c0_i32_1 = arith.constant 0 : i32
    return %c0_i32, %c0_i32_0 : i32, i32
  }
  func.func @transform_6(%arg0: i32) -> (i32, i32) {
    %c0_i32 = arith.constant 0 : i32
    %c0_i32_0 = arith.constant 0 : i32
    %c0_i32_1 = arith.constant 0 : i32
    return %c0_i32, %c0_i32_0 : i32, i32
  }
  func.func @transform_7(%arg0: i32) -> (i32, i32) {
    %c0_i32 = arith.constant 0 : i32
    %c0_i32_0 = arith.constant 0 : i32
    %c0_i32_1 = arith.constant 0 : i32
    return %c0_i32, %c0_i32_0 : i32, i32
  }
  func.func @transform_8(%arg0: i32) -> (i32, i32, i32) {
    %c0_i32 = arith.constant 0 : i32
    %c0_i32_0 = arith.constant 0 : i32
    %c0_i32_1 = arith.constant 0 : i32
    return %arg0, %c0_i32, %c0_i32_0 : i32, i32, i32
  }
}

</mosaic_0001>

<bundles_post_ra>
// kernel: tpu_custom_call.1
= control target key start
LH: loop header
LB: loop body
LE: loop exit
PB: predicated region body
PF: predicated region fallthrough
CT: control target
= control target key end

     0   :  { %s2150_s0 = inlined_call_operand.hbm [shape: bf16[16,8,128], index: 0, kind: input, shape index: {}]   ;;  %s2151_s1 = inlined_call_operand.hbm [shape: f32[8,128], index: 1, kind: input, shape index: {}]   ;;  %s2152_s2 = inlined_call_operand.hbm [shape: f32[8,128], index: 2, kind: input, shape index: {}]   ;;  %s2153_s3 = inlined_call_operand.hbm [shape: bf16[128,512], index: 3, kind: input, shape index: {}]   ;;  %s2154_s4 = inlined_call_operand.hbm [shape: bf16[128,512], index: 4, kind: input, shape index: {}]   ;;  %s2155_s5 = inlined_call_operand.vmem [shape: f32[1,512], index: 5, kind: input, shape index: {}]   ;;  %s2156_s6 = inlined_call_operand.hbm [shape: bf16[128,128], index: 6, kind: input, shape index: {}]   ;;  %s2157_s7 = inlined_call_operand.vmem [shape: f32[1,128], index: 7, kind: input, shape index: {}]   ;;  %s2158_s8 = inlined_call_operand.hbm [shape: f32[16,8,384], index: 8, kind: output, shape index: {}]  }
   0x1   :  { %2163 = sst [smem:[#allocation21_spill]] %s2151_s1 }
   0x2   :  { %2164 = sst [smem:[#allocation22_spill]] %s2152_s2 }
   0x3   :  { %2165 = sst [smem:[#allocation23_spill]] %s2153_s3 }
   0x4   :  { %13 = vsyncpa [#allocation5], 0 }
   0x5   :  { %15 = vsyncpa [#allocation5 + $0x1], 0 }
   0x6   :  { %16 = vsyncpa [#allocation8], 0 }
   0x7   :  { %17 = vsyncpa [#allocation11], 0 }
   0x8   :  { %18 = vsyncpa [#allocation14], 0 }
   0x9   :  { %19 = vsyncpa [#allocation6], 0 }
   0xa   :  { %21 = vsyncpa [#allocation6 + $0x1], 0  ;;  %s1903_s27 = smov 0   ;;  %s1905_s28 = smov 0  }
   0xb   :  { %s1907_s29 = smov 0   ;;  %s1909_s30 = smov 0  }
   0xc LB: > { %s1844_s9 = smov [#allocation7]   ;;  %s1924_s11 = sadd.s32 4294967295, %s1842_s30   ;;  %s1842_s30 = sphi %s1909_s30, %s2190_s30   ;;  %s1838_s29 = sphi %s1907_s29, %s2189_s29   ;;  %s1834_s28 = sphi %s1905_s28, %s2188_s28   ;;  %s1830_s27 = sphi %s1903_s27, %s2187_s27  }
   0xd   : > { %s244_s10 = sshll.u32 %s1844_s9, 4  ;;  %p1257_p0 = scmp.ge.s32.totalorder %s1842_s30, 1  ;;  %s245_s10 = int_to_ptr.vmem [resolvable:$true] %s244_s10 }
   0xe   : > { %p2159_p1 = scmp.eq.s32.totalorder %s1924_s11, 0  ;;  %p231_p2 = scmp.lt.s32.totalorder %s1842_s30, 17 }
   0xf   : > { %s1845_s13 = smov [#allocation10]   ;;  %s1846_s16 = smov [#allocation9]  }
  0x10   : > { %p1930_p4 = pnand %p1257_p0, %p231_p2  ;;  %s265_s14 = sshll.u32 %s1845_s13, 4  ;;  %s1936_s14 = int_to_ptr.vmem [resolvable:$true] %s265_s14 }
  0x11   : > { %s255_s17 = sshll.u32 %s1846_s16, 4  ;;  %s1619_s19 = scalar_lea.vmem %s245_s10, 128  ;;  %s1944_s17 = int_to_ptr.vmem [resolvable:$true] %s255_s17 }
  0x12   : > { %s2166_s12 = scalar_select %p1930_p4, 1, 0 }
  0x13   : > { %p1408_p5 = pneg %p1930_p4  ;;  %p1620_p8 = scmp.ne.s32.totalorder %s245_s10, %s1619_s19 }
  0x14   : > { %p1627_p11 = scmp.lt.s32.totalorder %s245_s10, %s245_s10  ;;  %p1628_p12 = scmp.lt.s32.totalorder %s1619_s19, %s1619_s19 }
  0x15   : > { %p1940_p6 = pnand %p1408_p5, %p2159_p1 }
  0x16   : > { %p1629_p13 = por %p1628_p12, %p1627_p11 }
  0x17   : > { %p1948_p7 = pneg %p1940_p6 }
  0x19   : > { %p1622_p9 = pnand %p1620_p8, %p1948_p7 }
  0x1b   : > { %p1623_p10 = pneg %p1622_p9 }
  0x1d   : > { %p1630_p0 = pnand %p1629_p13, %p1623_p10 }
  0x1f   : > { %1633 = shalt.err (!%p1630_p0)
}
  0x20   : > { %s2169_s1 = sld [smem:[#allocation21_spill]]  ;;  %s1645_s22 = scalar_lea.vmem %s1936_s14, 4096 }
  0x21   : > { %p1646_p2 = scmp.ne.s32.totalorder %s1936_s14, %s1645_s22  ;;  %p1653_p9 = scmp.lt.s32.totalorder %s1936_s14, %s1936_s14 }
  0x22   : > { %p1654_p11 = scmp.lt.s32.totalorder %s1645_s22, %s1645_s22 }
  0x23   : > { %p1648_p5 = pnand %p1646_p2, %p1948_p7 }
  0x24   : > { %p1655_p10 = por %p1654_p11, %p1653_p9 }
  0x25   : > { %p1649_p8 = pneg %p1648_p5 }
  0x26   : > { %1411 = dma.hbm_to_vmem [thread:$0]  (!%p1940_p6), %s2169_s1, 128, %s245_s10, [#allocation8]  }
  0x27   : > { %p1656_p12 = pnand %p1655_p10, %p1649_p8 }
  0x29   : > { %1659 = shalt.err (!%p1656_p12)
}
  0x2a   : > { %s1847_s23 = smov 256   ;;  %s1848_s24 = smov 16  }
  0x2b   : > { %s2170_s3 = sld [smem:[#allocation23_spill]]  ;;  %s1671_s9 = scalar_lea.vmem %s1944_s17, 128 }
  0x2c   : > { %p1672_p13 = scmp.ne.s32.totalorder %s1944_s17, %s1671_s9  ;;  %p1679_p5 = scmp.lt.s32.totalorder %s1944_s17, %s1944_s17 }
  0x2d   : > { %p1680_p8 = scmp.lt.s32.totalorder %s1671_s9, %s1671_s9 }
  0x2e   : > { %p1674_p0 = pnand %p1672_p13, %p1948_p7 }
  0x2f   : > { %p1681_p9 = por %p1680_p8, %p1679_p5 }
  0x30   : > { %p1675_p2 = pneg %p1674_p0 }
  0x31   : > { %1417 = dma.hbm_to_vmem [thread:$0]  (!%p1940_p6), %s2170_s3, 4096, %s1936_s14, [#allocation11], %s1847_s23, %s1847_s23, %s1848_s24  }
  0x32   : > { %p1682_p11 = pnand %p1681_p9, %p1675_p2 }
  0x34   : > { %1685 = shalt.err (!%p1682_p11)
}
  0x35   : > { %s2171_s2 = sld [smem:[#allocation22_spill]]  ;;  %s1849_s14 = smov [#allocation12]  }
  0x36   : > { %s278_s16 = sshll.u32 %s1849_s14, 4  ;;  %s1850_s19 = smov [#allocation13]   ;;  %s279_s16 = int_to_ptr.vmem [resolvable:$true] %s278_s16 }
  0x37   : > { %s294_s20 = sshll.u32 %s1850_s19, 4  ;;  %s1697_s21 = scalar_lea.vmem %s279_s16, 4096  ;;  %s295_s20 = int_to_ptr.vmem [resolvable:$true] %s294_s20 }
  0x38   : > { %p1698_p10 = scmp.ne.s32.totalorder %s279_s16, %s1697_s21  ;;  %p1705_p0 = scmp.lt.s32.totalorder %s279_s16, %s279_s16 }
  0x39   : > { %p1706_p2 = scmp.lt.s32.totalorder %s1697_s21, %s1697_s21 }
  0x3a   : > { %p1700_p12 = pnand %p1698_p10, %p1948_p7 }
  0x3b   : > { %1414 = dma.hbm_to_vmem [thread:$0]  (!%p1940_p6), %s2171_s2, 128, %s1944_s17, [#allocation8]  }
  0x3c   : > { %p1701_p13 = pneg %p1700_p12  ;;  %p1707_p5 = por %p1706_p2, %p1705_p0 }
  0x3e   : > { %p1708_p8 = pnand %p1707_p5, %p1701_p13 }
  0x40   : > { %1711 = shalt.err (!%p1708_p8)
}
  0x41   : > { %1420 = dma.hbm_to_vmem [thread:$0]  (!%p1940_p6), %s2154_s4, 4096, %s279_s16, [#allocation11], %s1847_s23, %s1847_s23, %s1848_s24  }
  0x42   : > { %s1723_s25 = scalar_lea.vmem %s295_s20, 1024  ;;  %p1731_p12 = scmp.lt.s32.totalorder %s295_s20, %s295_s20 }
  0x43   : > { %p1724_p9 = scmp.ne.s32.totalorder %s295_s20, %s1723_s25  ;;  %p1732_p0 = scmp.lt.s32.totalorder %s1723_s25, %s1723_s25 }
  0x45   : > { %p1726_p11 = pnand %p1724_p9, %p1948_p7  ;;  %p1733_p13 = por %p1732_p0, %p1731_p12 }
  0x47   : > { %p1727_p10 = pneg %p1726_p11 }
  0x49   : > { %p1734_p2 = pnand %p1733_p13, %p1727_p10 }
  0x4b   : > { %1737 = shalt.err (!%p1734_p2)
}
  0x4c   : > { %s1851_s26 = smov 64   ;;  %s1852_s18 = smov 4  }
  0x4d   : > { %1423 = dma.hbm_to_vmem [thread:$0]  (!%p1940_p6), %s2156_s6, 1024, %s295_s20, [#allocation14], %s1851_s26, %s1851_s26, %s1852_s18  }
  0x4e   : > { %s1256_s9 = sadd.s32 4294967294, %s1842_s30   ;;  %s2005_s10 = sadd.s32 1, %s1842_s30  }
  0x4f   : > { %s34_s13 = sadd.s32 1, %s1838_s29  ;;  %s31_s14 = ssub.s32 %s1842_s30, %s2005_s10 }
  0x50   : > { %p41_p7 = scmp.ne.s32.totalorder %s1838_s29, %s1834_s28  ;;  %p32_p5 = scmp.eq.s32.totalorder %s31_s14, 0 }
  0x51   : > { %p42_p8 = scmp.eq.s32.totalorder %s1842_s30, 0  ;;  %p47_p9 = scmp.ne.s32.totalorder %s1834_s28, %s1830_s27 }
  0x52   : > { %p218_p11 = scmp.eq.s32.totalorder %s1924_s11, 15  ;;  %p224_p0 = scmp.eq.s32.totalorder %s1256_s9, 15 }
  0x53   : > { %s2017_s16 = scalar_select %p32_p5, %s1838_s29, %s34_s13  }
  0x54   : > { %p43_p10 = por %p42_p8, %p41_p7  ;;  %p2021_p12 = por %p2159_p1, %p47_p9 }
  0x55   : > { %p2025_p6 = por %p218_p11, %p41_p7  ;;  %p1437_p13 = scmp.lt.s32.totalorder %s1842_s30, 16 }
  0x56   : > { %s2172_s15 = scalar_select %p2021_p12, 1, 0 }
  0x57   : > { %s2173_s19 = scalar_select %p2025_p6, 1, 0 }
  0x58   : > { %s311_s20 = sand.u32 1, %s1838_s29   ;;  %p2031_p2 = por %p224_p0, %p47_p9 }
  0x59   : > { %s1264_s17 = sshll.u32 %s311_s20, 2  ;;  %s1265_s22 = sshll.u32 %s1842_s30, 6 }
  0x5a   : > { %s2174_s21 = scalar_select %p2031_p2, 1, 0 }
  0x5b   : > { %s2039_s18 = scalar_lea.hbm %s2150_s0, %s1265_s22  ;;  %s315_s23 = scalar_lea.vmem [#allocation4], %s1264_s17 }
  0x5c   : > { %s322_s24 = sshll.u32 %s315_s23, 4  ;;  %p2041_p7 = pnand %p1437_p13, %p43_p10  ;;  %s323_s24 = int_to_ptr.vmem [resolvable:$true] %s322_s24 }
  0x5d   : > { %s312_s13 = scalar_lea.sflag [#allocation5], %s311_s20  ;;  %s1738_s14 = scalar_lea.hbm %s2039_s18, 64 }
  0x5e   : > { %p1739_p5 = scmp.ne.s32.totalorder %s2039_s18, %s1738_s14  ;;  %p1740_p8 = pneg %p2041_p7 }
  0x5f   : > { %s1743_s26 = scalar_lea.hbm %s2150_s0, 1024  ;;  %p1744_p10 = scmp.lt.s32.totalorder %s2039_s18, %s2150_s0 }
  0x60   : > { %p1741_p9 = pnand %p1740_p8, %p1739_p5  ;;  %p1745_p0 = scmp.lt.s32.totalorder %s1743_s26, %s1738_s14 }
  0x62   : > { %p1742_p11 = pneg %p1741_p9  ;;  %p1746_p13 = por %p1745_p0, %p1744_p10 }
  0x64   : > { %p1747_p3 = pnand %p1746_p13, %p1742_p11 }
  0x66   : > { %1750 = shalt.err (!%p1747_p3)
}
  0x67   : > { %s1751_s23 = scalar_lea.vmem %s323_s24, 64  ;;  %s1853_s20 = smov [#allocation4]  }
  0x68   : > { %p1752_p1 = scmp.ne.s32.totalorder %s323_s24, %s1751_s23  ;;  %s1756_s2 = sshll.u32 %s1853_s20, 4  ;;  %s1757_s2 = int_to_ptr.vmem [resolvable:$false] %s1756_s2 }
  0x69   : > { %s1758_s3 = scalar_lea.vmem %s1757_s2, 128  ;;  %p1759_p5 = scmp.lt.s32.totalorder %s323_s24, %s1757_s2 }
  0x6a   : > { %p1754_p2 = pnand %p1752_p1, %p1740_p8  ;;  %p1760_p9 = scmp.lt.s32.totalorder %s1758_s3, %s1751_s23 }
  0x6c   : > { %p1755_p6 = pneg %p1754_p2  ;;  %p1761_p12 = por %p1760_p9, %p1759_p5 }
  0x6e   : > { %p1762_p4 = pnand %p1761_p12, %p1755_p6 }
  0x70   : > { %1765 = shalt.err (!%p1762_p4)
}
  0x71   : > { %1427 = dma.hbm_to_vmem [thread:$0]  (!%p2041_p7), %s2039_s18, 64, %s323_s24, %s312_s13  }
  0x72   : > { %p2176_p11 = scmp.ne.s32.totalorder %s2166_s12, 0 }
  0x73   : > { %s2062_s1 = sand.u32 (!%p2176_p11), 1, %s1834_s28   ;;  %p2177_p1 = scmp.ne.s32.totalorder (!%p2176_p11), %s2172_s15, 0 }
  0x74   : > { %331 = sbr.rel (%p2176_p11) target bundleno = 670 (0x29e), region = 52  ;;  %s1267_s14 = sshll.u32 (!%p2176_p11), %s2062_s1, 2 }
  0x75   : > { %s334_s22 = scalar_lea.sflag (!%p2176_p11), [#allocation5], %s2062_s1  ;;  %s2066_s2 = scalar_lea.vmem (!%p2176_p11), [#allocation4], %s1267_s14 }
  0x79   : > { %1809 = dma.done.wait (%p2177_p1), %s334_s22, 64  }
  0x7a   : > { %1811 = vsyncadd (%p2177_p1), %s334_s22, 4294967232  ;;  %p2178_p3 = scmp.eq.s32.totalorder %s1924_s11, 0 }
  0x7c   : > { %1813 = dma.done.wait (%p2178_p3), [#allocation8], 256   ;;  %p2179_p4 = pmov %p2178_p3 }
  0x7d   : > { %p2180_p12 = pmov %p2178_p3 }
  0x7e   : > { %1815 = vsyncadd (%p2179_p4), [#allocation8], 4294967040 }
  0x7f   : > { %1817 = dma.done.wait (%p2180_p12), [#allocation11], 8192   ;;  %p2181_p6 = pmov %p2178_p3 }
  0x80   : > { %p2182_p2 = pmov %p2178_p3 }
  0x81   : > { %1819 = vsyncadd (%p2181_p6), [#allocation11], 4294959104 }
  0x82   : > { %1821 = dma.done.wait (%p2182_p2), [#allocation14], 1024   ;;  %p2183_p7 = pmov %p2182_p2 }
  0x83   : > { %s1382_s3 = smul.u32 24, %s2062_s1  ;;  %p2184_p8 = scmp.ne.s32.totalorder %s1924_s11, 0 }
  0x84   : > { %1823 = vsyncadd (%p2183_p7), [#allocation14], 4294966272 }
  0x85   : > { %s2085_s12 = scalar_lea.vmem [#allocation15], %s1382_s3  ;;  %394 = sbr.rel (%p2184_p8) target bundleno = 140 (0x8c), region = 80 }
  0x8a   : > { %v395_v0 = vld [vmem:[#allocation7] sm:$0xff]  ;;  %v397_v1 = vld [vmem:[#allocation9] sm:$0xff] }
  0x8b   : > { %396 = vst [vmem:[#allocation2] sm:$0xff] %v395_v0  ;;  %398 = vst [vmem:[#allocation3] sm:$0xff] %v397_v1 }
  0x8c PF: > { %v1488_v2 = vld [vmem:[#allocation12 + $0xe4] ss:$16 sps:$4 sm:$0xff]   ;;  %v1490_v3 = vld [vmem:[#allocation12 + $0xec] ss:$16 sps:$4 sm:$0xff]   ;;  %v1854_v4 = vmov 0   ;;  %vm1856_vm0 = vmmov 0  }
  0x8d   : > { %659 = vmatprep.mubr.bf16.mxu0 %v1854_v4  ;;  %700 = vmatprep.mubr.bf16.mxu1 %v1854_v4  ;;  %v1492_v5 = vld [vmem:[#allocation12 + $0xe0] ss:$16 sps:$4 sm:$0xff]   ;;  %v1493_v6 = vld [vmem:[#allocation12 + $0xe8] ss:$16 sps:$4 sm:$0xff]   ;;  %v1494_v7 = vld [vmem:[#allocation12 + $0xc4] ss:$16 sps:$4 sm:$0xff]  }
  0x8e   : > { %627 = vmatprep.subr.bf16.mxu0 %v1488_v2  ;;  %668 = vmatprep.subr.bf16.mxu1 %v1490_v3  ;;  %v1496_v8 = vld [vmem:[#allocation12 + $0xcc] ss:$16 sps:$4 sm:$0xff]   ;;  %v1498_v9 = vld [vmem:[#allocation12 + $0xc0] ss:$16 sps:$4 sm:$0xff]   ;;  %v1499_v10 = vld [vmem:[#allocation12 + $0xc8] ss:$16 sps:$4 sm:$0xff]  }
  0x8f   : > { %628 = vmatpush1.bf16.msra.mxu0 %v1492_v5  ;;  %669 = vmatpush1.bf16.msra.mxu1 %v1493_v6  ;;  %v1500_v11 = vld [vmem:[#allocation12 + $0xa4] ss:$16 sps:$4 sm:$0xff]   ;;  %v1502_v12 = vld [vmem:[#allocation12 + $0xac] ss:$16 sps:$4 sm:$0xff]   ;;  %v1504_v13 = vld [vmem:[#allocation12 + $0xa0] ss:$16 sps:$4 sm:$0xff]  }
  0x90   : > { %629 = vmatprep.subr.bf16.mxu0 %v1494_v7  ;;  %670 = vmatprep.subr.bf16.mxu1 %v1496_v8  ;;  %v1505_v14 = vld [vmem:[#allocation12 + $0xa8] ss:$16 sps:$4 sm:$0xff]   ;;  %v1506_v15 = vld [vmem:[#allocation12 + $0x84] ss:$16 sps:$4 sm:$0xff]   ;;  %v1508_v16 = vld [vmem:[#allocation12 + $0x8c] ss:$16 sps:$4 sm:$0xff]  }
  0x91   : > { %v1510_v17 = vld [vmem:[#allocation12 + $0x80] ss:$16 sps:$4 sm:$0xff]   ;;  %v1511_v18 = vld [vmem:[#allocation12 + $0x88] ss:$16 sps:$4 sm:$0xff]   ;;  %v1512_v19 = vld [vmem:[#allocation12 + $0x64] ss:$16 sps:$4 sm:$0xff]  }
  0x92   : > { %v1514_v20 = vld [vmem:[#allocation12 + $0x6c] ss:$16 sps:$4 sm:$0xff]   ;;  %v1516_v21 = vld [vmem:[#allocation12 + $0x60] ss:$16 sps:$4 sm:$0xff]   ;;  %v1517_v22 = vld [vmem:[#allocation12 + $0x68] ss:$16 sps:$4 sm:$0xff]  }
  0x93   : > { %630 = vmatpush1.bf16.msra.mxu0 %v1498_v9  ;;  %671 = vmatpush1.bf16.msra.mxu1 %v1499_v10  ;;  %v1518_v23 = vld [vmem:[#allocation12 + $0x44] ss:$16 sps:$4 sm:$0xff]   ;;  %v1520_v24 = vld [vmem:[#allocation12 + $0x4c] ss:$16 sps:$4 sm:$0xff]   ;;  %v1522_v25 = vld [vmem:[#allocation12 + $0x40] ss:$16 sps:$4 sm:$0xff]  }
  0x94   : > { %631 = vmatprep.subr.bf16.mxu0 %v1500_v11  ;;  %672 = vmatprep.subr.bf16.mxu1 %v1502_v12  ;;  %v1523_v26 = vld [vmem:[#allocation12 + $0x48] ss:$16 sps:$4 sm:$0xff]   ;;  %v1524_v27 = vld [vmem:[#allocation12 + $0x24] ss:$16 sps:$4 sm:$0xff]   ;;  %v1526_v28 = vld [vmem:[#allocation12 + $0x2c] ss:$16 sps:$4 sm:$0xff]  }
  0x95   : > { %v1528_v29 = vld [vmem:[#allocation12 + $0x20] ss:$16 sps:$4 sm:$0xff]   ;;  %v1529_v30 = vld [vmem:[#allocation12 + $0x28] ss:$16 sps:$4 sm:$0xff]   ;;  %v1530_v31 = vld [vmem:[#allocation12 + $0x4] ss:$16 sps:$4 sm:$0xff]  }
  0x96   : > { %v1532_v32 = vld [vmem:[#allocation12 + $0xc] ss:$16 sps:$4 sm:$0xff]   ;;  %v1534_v33 = vld [vmem:[#allocation12] ss:$16 sps:$4 sm:$0xff]   ;;  %v1535_v34 = vld [vmem:[#allocation12 + $0x8] ss:$16 sps:$4 sm:$0xff]  }
  0x97   : > { %632 = vmatpush1.bf16.msra.mxu0 %v1504_v13  ;;  %673 = vmatpush1.bf16.msra.mxu1 %v1505_v14  ;;  %v400_v35 = vld [vmem:[#allocation2] sm:$0xff]  ;;  %v1538_v36 = vld [vmem:[#allocation10 + $0xe4] ss:$16 sps:$4 sm:$0xff]   ;;  %v1536_v39 = vld [vmem:[#allocation10 + $0xe0] ss:$16 sps:$4 sm:$0xff]   ;;  %v1855_v7 = vmov 0.0  }
  0x98   : > { %633 = vmatprep.subr.bf16.mxu0 %v1506_v15  ;;  %674 = vmatprep.subr.bf16.mxu1 %v1508_v16  ;;  %v1541_v37 = vld [vmem:[#allocation10 + $0xec] ss:$16 sps:$4 sm:$0xff]   ;;  %v434_v38 = vpack.c.bf16 %v400_v35, %v400_v35  ;;  %v1539_v40 = vld [vmem:[#allocation10 + $0xe8] ss:$16 sps:$4 sm:$0xff]   ;;  %v1544_v41 = vld [vmem:[#allocation10 + $0xc4] ss:$16 sps:$4 sm:$0xff]  }
  0x99   : > { %v1547_v42 = vld [vmem:[#allocation10 + $0xcc] ss:$16 sps:$4 sm:$0xff]   ;;  %v1542_v43 = vld [vmem:[#allocation10 + $0xc0] ss:$16 sps:$4 sm:$0xff]   ;;  %v1545_v44 = vld [vmem:[#allocation10 + $0xc8] ss:$16 sps:$4 sm:$0xff]  }
  0x9a   : > { %v1550_v45 = vld [vmem:[#allocation10 + $0xa4] ss:$16 sps:$4 sm:$0xff]   ;;  %v1553_v46 = vld [vmem:[#allocation10 + $0xac] ss:$16 sps:$4 sm:$0xff]   ;;  %v1548_v47 = vld [vmem:[#allocation10 + $0xa0] ss:$16 sps:$4 sm:$0xff]  }
  0x9b   : > { %634 = vmatpush1.bf16.msra.mxu0 %v1510_v17  ;;  %675 = vmatpush1.bf16.msra.mxu1 %v1511_v18  ;;  %v1551_v48 = vld [vmem:[#allocation10 + $0xa8] ss:$16 sps:$4 sm:$0xff]   ;;  %v1556_v49 = vld [vmem:[#allocation10 + $0x84] ss:$16 sps:$4 sm:$0xff]   ;;  %v1559_v50 = vld [vmem:[#allocation10 + $0x8c] ss:$16 sps:$4 sm:$0xff]  }
  0x9c   : > { %635 = vmatprep.subr.bf16.mxu0 %v1512_v19  ;;  %676 = vmatprep.subr.bf16.mxu1 %v1514_v20  ;;  %v1554_v51 = vld [vmem:[#allocation10 + $0x80] ss:$16 sps:$4 sm:$0xff]   ;;  %v1557_v52 = vld [vmem:[#allocation10 + $0x88] ss:$16 sps:$4 sm:$0xff]   ;;  %v1562_v53 = vld [vmem:[#allocation10 + $0x64] ss:$16 sps:$4 sm:$0xff]  }
  0x9d   : > { %v1565_v54 = vld [vmem:[#allocation10 + $0x6c] ss:$16 sps:$4 sm:$0xff]   ;;  %v1560_v55 = vld [vmem:[#allocation10 + $0x60] ss:$16 sps:$4 sm:$0xff]   ;;  %v1563_v56 = vld [vmem:[#allocation10 + $0x68] ss:$16 sps:$4 sm:$0xff]  }
  0x9e   : > { %v1568_v57 = vld [vmem:[#allocation10 + $0x44] ss:$16 sps:$4 sm:$0xff]   ;;  %v1571_v58 = vld [vmem:[#allocation10 + $0x4c] ss:$16 sps:$4 sm:$0xff]   ;;  %v1566_v59 = vld [vmem:[#allocation10 + $0x40] ss:$16 sps:$4 sm:$0xff]  }
  0x9f   : > { %636 = vmatpush1.bf16.msra.mxu0 %v1516_v21  ;;  %677 = vmatpush1.bf16.msra.mxu1 %v1517_v22  ;;  %v1569_v60 = vld [vmem:[#allocation10 + $0x48] ss:$16 sps:$4 sm:$0xff]   ;;  %v1574_v61 = vld [vmem:[#allocation10 + $0x24] ss:$16 sps:$4 sm:$0xff]   ;;  %v1577_v62 = vld [vmem:[#allocation10 + $0x2c] ss:$16 sps:$4 sm:$0xff]  }
  0xa0   : > { %637 = vmatprep.subr.bf16.mxu0 %v1518_v23  ;;  %678 = vmatprep.subr.bf16.mxu1 %v1520_v24  ;;  %v1572_v63 = vld [vmem:[#allocation10 + $0x20] ss:$16 sps:$4 sm:$0xff]   ;;  %v1575_v0 = vld [vmem:[#allocation10 + $0x28] ss:$16 sps:$4 sm:$0xff]   ;;  %v1580_v1 = vld [vmem:[#allocation10 + $0x4] ss:$16 sps:$4 sm:$0xff]   ;;  %v953_v23 = vlaneseq }
  0xa1   : > { %v1583_v2 = vld [vmem:[#allocation10 + $0xc] ss:$16 sps:$4 sm:$0xff]   ;;  %v1578_v3 = vld [vmem:[#allocation10] ss:$16 sps:$4 sm:$0xff]   ;;  %s1383_s13 = smul.u32 384, %s1924_s11  ;;  %s1138_s25 = sshll.u32 %s2085_s12, 4  ;;  %s2109_s25 = int_to_ptr.vmem [resolvable:$true] %s1138_s25 }
  0xa2   : > { %v399_v5 = vld [vmem:[%s2066_s2] sm:$0xf]  ;;  %v1584_v6 = vld [vmem:[#allocation13 + $0x38] sm:$0xff]   ;;  %v1585_v8 = vld [vmem:[#allocation13 + $0x30] sm:$0xff]   ;;  %v954_v24 = vshrl.u32 %v953_v23, 7  ;;  %s1124_s11 = scalar_lea.sflag [#allocation6], %s2062_s1 }
  0xa3   : > { %638 = vmatpush1.bf16.msra.mxu0 %v1522_v25  ;;  %679 = vmatpush1.bf16.msra.mxu1 %v1523_v26  ;;  %v1586_v9 = vld [vmem:[#allocation13 + $0x28] sm:$0xff]   ;;  %v1587_v10 = vld [vmem:[#allocation13 + $0x20] sm:$0xff]   ;;  %v1588_v11 = vld [vmem:[#allocation13 + $0x18] sm:$0xff]   ;;  %s2107_s23 = scalar_lea.hbm %s2158_s8, %s1383_s13  ;;  %s1766_s20 = scalar_lea.vmem %s2109_s25, 384 }
  0xa4   : > { %639 = vmatprep.subr.bf16.mxu0 %v1524_v27  ;;  %680 = vmatprep.subr.bf16.mxu1 %v1526_v28  ;;  %v1589_v12 = vld [vmem:[#allocation13 + $0x10] sm:$0xff]   ;;  %v1590_v13 = vld [vmem:[#allocation13 + $0x8] sm:$0xff]   ;;  %v1591_v14 = vld [vmem:[#allocation13] sm:$0xff]   ;;  %v955_v25 = vsub.s32 0, %v954_v24  ;;  %v959_v27 = vsub.s32 1, %v954_v24  ;;  %p1767_p10 = scmp.ne.s32.totalorder %s2109_s25, %s1766_s20  ;;  %p2185_p0 = scmp.ne.s32.totalorder %s2173_s19, 0 }
  0xa5   : > { %v951_v26 = vld [vmem:[%s2155_s5] sm:$0xf]  ;;  %s1857_s14 = smov [#allocation15]  }
  0xa6   : > { %v956_v28 = vrot.slane %v951_v26, %v955_v25  ;;  %p1768_p13 = pnand %p1767_p10, %p2185_p0  ;;  %s1770_s22 = sshll.u32 %s1857_s14, 4  ;;  %s1771_s22 = int_to_ptr.vmem [resolvable:$false] %s1770_s22 }
  0xa7   : > { %640 = vmatpush1.bf16.msra.mxu0 %v1528_v29  ;;  %681 = vmatpush1.bf16.msra.mxu1 %v1529_v30  ;;  %s1772_s2 = scalar_lea.vmem %s1771_s22, 768  ;;  %p1773_p9 = scmp.lt.s32.totalorder %s2109_s25, %s1771_s22 }
  0xa8   : > { %641 = vmatprep.subr.bf16.mxu0 %v1530_v31  ;;  %682 = vmatprep.subr.bf16.mxu1 %v1532_v32  ;;  %v960_v32 = vrot.slane %v951_v26, %v959_v27  ;;  %p1769_p5 = pneg %p1768_p13  ;;  %p1774_p11 = scmp.lt.s32.totalorder %s1772_s2, %s1766_s20 }
  0xaa   : > { %p1775_p1 = por %p1774_p11, %p1773_p9 }
  0xab   : > { %642 = vmatpush1.bf16.msra.mxu0 %v1534_v33  ;;  %683 = vmatpush1.bf16.msra.mxu1 %v1535_v34 }
  0xac   : > { %869 = vmatprep.subr.bf16.mxu0 %v1538_v36  ;;  %910 = vmatprep.subr.bf16.mxu1 %v1541_v37  ;;  %p1776_p3 = pnand %p1775_p1, %p1769_p5 }
  0xae   : > { %660 = vmatmul.mubr.bf16.vlgmr.msra.gmra.mxu0 %v434_v38  ;;  %701 = vmatmul.mubr.bf16.vlgmr.msra.gmra.mxu1 %v434_v38 }
  0xaf   : > { %870 = vmatpush1.bf16.msra.mxu0 %v1536_v39  ;;  %911 = vmatpush1.bf16.msra.mxu1 %v1539_v40 }
  0xb0   : > { %871 = vmatprep.subr.bf16.mxu0 %v1544_v41  ;;  %912 = vmatprep.subr.bf16.mxu1 %v1547_v42  ;;  %v967_v41 = vsub.s32 3, %v954_v24 }
  0xb1   : > { %901 = vmatprep.mubr.bf16.mxu0 %v1854_v4  ;;  %942 = vmatprep.mubr.bf16.mxu1 %v1854_v4  ;;  %v1581_v4 = vld [vmem:[#allocation10 + $0x8] ss:$16 sps:$4 sm:$0xff]  }
  0xb3   : > { %872 = vmatpush1.bf16.msra.mxu0 %v1542_v43  ;;  %913 = vmatpush1.bf16.msra.mxu1 %v1545_v44 }
  0xb4   : > { %873 = vmatprep.subr.bf16.mxu0 %v1550_v45  ;;  %914 = vmatprep.subr.bf16.mxu1 %v1553_v46  ;;  %v968_v46 = vrot.slane %v951_v26, %v967_v41 }
  0xb7   : > { %874 = vmatpush1.bf16.msra.mxu0 %v1548_v47  ;;  %915 = vmatpush1.bf16.msra.mxu1 %v1551_v48  ;;  %v963_v47 = vsub.s32 2, %v954_v24 }
  0xb8   : > { %875 = vmatprep.subr.bf16.mxu0 %v1556_v49  ;;  %916 = vmatprep.subr.bf16.mxu1 %v1559_v50 }
  0xb9   : > { %v964_v50 = vrot.slane %v951_v26, %v963_v47 }
  0xbb   : > { %876 = vmatpush1.bf16.msra.mxu0 %v1554_v51  ;;  %917 = vmatpush1.bf16.msra.mxu1 %v1557_v52 }
  0xbc   : > { %877 = vmatprep.subr.bf16.mxu0 %v1562_v53  ;;  %918 = vmatprep.subr.bf16.mxu1 %v1565_v54 }
  0xbf   : > { %878 = vmatpush1.bf16.msra.mxu0 %v1560_v55  ;;  %919 = vmatpush1.bf16.msra.mxu1 %v1563_v56 }
  0xc0   : > { %879 = vmatprep.subr.bf16.mxu0 %v1568_v57  ;;  %920 = vmatprep.subr.bf16.mxu1 %v1571_v58 }
  0xc3   : > { %880 = vmatpush1.bf16.msra.mxu0 %v1566_v59  ;;  %921 = vmatpush1.bf16.msra.mxu1 %v1569_v60  ;;  %v401_v59 = vld [vmem:[#allocation3] sm:$0xff] }
  0xc4   : > { %881 = vmatprep.subr.bf16.mxu0 %v1574_v61  ;;  %922 = vmatprep.subr.bf16.mxu1 %v1577_v62 }
  0xc7   : > { %882 = vmatpush1.bf16.msra.mxu0 %v1572_v63  ;;  %923 = vmatpush1.bf16.msra.mxu1 %v1575_v0 }
  0xc8   : > { %883 = vmatprep.subr.bf16.mxu0 %v1580_v1  ;;  %924 = vmatprep.subr.bf16.mxu1 %v1583_v2 }
  0xcb   : > { %884 = vmatpush1.bf16.msra.mxu0 %v1578_v3  ;;  %925 = vmatpush1.bf16.msra.mxu1 %v1581_v4 }
  0xcc   : > { %1362 = vmatprep.subr.bf16.mxu0 %v1855_v7 }
  0xce   : > { %902 = vmatmul.mubr.bf16.vlgmr.msra.gmra.mxu0 %v399_v5  ;;  %943 = vmatmul.mubr.bf16.vlgmr.msra.gmra.mxu1 %v399_v5 }
  0xcf   : > { %1363 = vmatpush3.bf16.msra.mxu0 %v1584_v6  ;;  %1378 = vmatprep.mubr.msk.bf16.mxu0 %vm1856_vm0, %v1855_v7  ;;  %v1341_v6 = vld [vmem:[%s2157_s7] ss:$0 sm:$0xff] }
  0xd0   : > { %1364 = vmatprep.subr.bf16.mxu0 %v1855_v7 }
  0xd3   : > { %1365 = vmatpush3.bf16.msra.mxu0 %v1585_v8 }
  0xd4   : > { %1366 = vmatprep.subr.bf16.mxu0 %v1855_v7 }
  0xd7   : > { %1367 = vmatpush3.bf16.msra.mxu0 %v1586_v9 }
  0xd8   : > { %1368 = vmatprep.subr.bf16.mxu0 %v1855_v7 }
  0xdb   : > { %1369 = vmatpush3.bf16.msra.mxu0 %v1587_v10 }
  0xdc   : > { %1370 = vmatprep.subr.bf16.mxu0 %v1855_v7 }
  0xdf   : > { %1371 = vmatpush3.bf16.msra.mxu0 %v1588_v11 }
  0xe0   : > { %1372 = vmatprep.subr.bf16.mxu0 %v1855_v7 }
  0xe3   : > { %1373 = vmatpush3.bf16.msra.mxu0 %v1589_v12 }
  0xe4   : > { %1374 = vmatprep.subr.bf16.mxu0 %v1855_v7 }
  0xe7   : > { %1375 = vmatpush3.bf16.msra.mxu0 %v1590_v13 }
  0xe8   : > { %1376 = vmatprep.subr.bf16.mxu0 %v1855_v7  ;;  %v1116_v7 = vand.u32 127, %v953_v23 }
  0xea   : > { %vm1117_vm1 = vcmp.ge.s32.totalorder %v1116_v7, 96 }
  0xeb   : > { %1377 = vmatpush3.bf16.msra.mxu0 %v1591_v14 }
 0x16e   : > { %v661_v15 = vpop.f32.mrf.mxu0  ;;  %v702_v16 = vpop.f32.mrf.mxu1 }
 0x170   : > { %v663_v17 = vpop.f32.mrf.mxu0  ;;  %v704_v18 = vpop.f32.mrf.mxu1 }
 0x172   : > { %v665_v19 = vpop.f32.mrf.mxu0  ;;  %v706_v20 = vpop.f32.mrf.mxu1 }
 0x174   : > { %v666_v21 = vpop.f32.mrf.mxu0  ;;  %v707_v22 = vpop.f32.mrf.mxu1 }
 0x18e   : > { %v903_v29 = vpop.f32.mrf.mxu0  ;;  %v944_v30 = vpop.f32.mrf.mxu1 }
 0x18f   : > { %v904_v31 = vadd.f32 %v903_v29, %v661_v15  ;;  %v945_v49 = vadd.f32 %v944_v30, %v702_v16 }
 0x190   : > { %v905_v33 = vpop.f32.mrf.mxu0  ;;  %v946_v34 = vpop.f32.mrf.mxu1 }
 0x191   : > { %v973_v35 = vadd.f32 %v956_v28, %v904_v31  ;;  %v906_v36 = vadd.f32 %v905_v33, %v663_v17  ;;  %v947_v45 = vadd.f32 %v946_v34, %v704_v18  ;;  %v975_v53 = vadd.f32 %v964_v50, %v945_v49 }
 0x192   : > { %v907_v37 = vpop.f32.mrf.mxu0  ;;  %v948_v38 = vpop.f32.mrf.mxu1 }
 0x193   : > { %v1338_v39 = vmul.f32 -1.442695, %v973_v35  ;;  %v974_v40 = vadd.f32 %v960_v32, %v906_v36  ;;  %v976_v48 = vadd.f32 %v968_v46, %v947_v45 }
 0x194   : > { %v908_v42 = vpop.f32.mrf.mxu0  ;;  %v949_v43 = vpop.f32.mrf.mxu1 }
 0x195   : > { %1592 = vpow2.f32 %v1338_v39  ;;  %v1339_v44 = vmul.f32 -1.442695, %v974_v40  ;;  %v1340_v51 = vmul.f32 -1.442695, %v976_v48 }
 0x197   : > { %1594 = vpow2.f32 %v1339_v44 }
 0x198   : > { %1596 = vpow2.f32 %v1340_v51 }
 0x1a2   : > { %v1593_v52 = vpop.eup %1592 }
 0x1a3   : > { %v980_v54 = vadd.f32 1.0, %v1593_v52 }
 0x1a4   : > { %v1595_v55 = vpop.eup %1594 }
 0x1a5   : > { %1598 = vrcp.f32 %v980_v54  ;;  %v986_v56 = vadd.f32 1.0, %v1595_v55  ;;  %v1597_v57 = vpop.eup %1596 }
 0x1a6   : > { %1600 = vtanh.f32 %v975_v53  ;;  %v993_v62 = vadd.f32 1.0, %v1597_v57 }
 0x1a7   : > { %1602 = vrcp.f32 %v986_v56 }
 0x1a8   : > { %1604 = vrcp.f32 %v993_v62 }
 0x1b2   : > { %v1599_v58 = vpop.eup %1598 }
 0x1b3   : > { %v1601_v60 = vpop.eup %1600 }
 0x1b4   : > { %v1603_v61 = vpop.eup %1602  ;;  %v997_v63 = vmul.f32 %v1601_v60, %v1599_v58 }
 0x1b5   : > { %v996_v0 = vmul.f32 %v1603_v61, %v401_v59  ;;  %v1605_v2 = vpop.eup %1604 }
 0x1b7   : > { %v998_v1 = vadd.f32 %v997_v63, %v996_v0 }
 0x1b9   : > { %1002 = vst [vmem:[#allocation3] sm:$0xff] %v998_v1  ;;  %1122 = vst [vmem:[%s2085_s12 + $0x10] sm:$0xff] %v998_v1  ;;  %1606 = vtanh.f32 %v998_v1 }
 0x1c6   : > { %v1607_v3 = vpop.eup %1606 }
 0x1c7   : > { %v1000_v4 = vmul.f32 %v1607_v3, %v1605_v2 }
 0x1c9   : > { %1001 = vst [vmem:[#allocation2] sm:$0xff] %v1000_v4  ;;  %v1003_v5 = vpack.c.bf16 %v1000_v4, %v1000_v4  ;;  %1121 = vst [vmem:[%s2085_s12 + $0x8] sm:$0xff] %v1000_v4 }
 0x1cb   : > { %1379 = vmatmul.mubr.bf16.vlgmr.msra.gmra.mxu0 %v1003_v5 }
 0x28b   : > { %v1109_v8 = vpop.f32.mrf.mxu0 }
 0x28c   : > { %v1110_v9 = vadd.f32 %v1341_v6, %v1109_v8 }
 0x28d   : > { %v1380_v10 = vpop.f32.mrf.mxu0 }
 0x28e   : > { %v1118_v11 = vmax.f32 %v1110_v9, 0.0 }
 0x28f   : > { %v1112_v12 = vpop.f32.mrf.mxu0 }
 0x290   : > { %v1119_v13 = vsel %vm1117_vm1, %v1118_v11, %v1110_v9 }
 0x291   : > { %1120 = vst [vmem:[%s2085_s12] sm:$0xff] %v1119_v13  ;;  %v1381_v14 = vpop.f32.mrf.mxu0 }
 0x292   : > { %1779 = shalt.err (!%p1776_p3)
}
 0x293   : > { %s1780_s3 = scalar_lea.hbm %s2107_s23, 384  ;;  %s1784_s15 = scalar_lea.hbm %s2158_s8, 6144 }
 0x294   : > { %p1781_p4 = scmp.ne.s32.totalorder %s2107_s23, %s1780_s3  ;;  %p1785_p2 = scmp.lt.s32.totalorder %s2107_s23, %s2158_s8 }
 0x295   : > { %p1786_p7 = scmp.lt.s32.totalorder %s1784_s15, %s1780_s3 }
 0x296   : > { %p1782_p12 = pnand %p1781_p4, %p2185_p0 }
 0x297   : > { %p1787_p8 = por %p1786_p7, %p1785_p2 }
 0x298   : > { %p1783_p6 = pneg %p1782_p12 }
 0x29a   : > { %p1788_p10 = pnand %p1787_p8, %p1783_p6 }
 0x29c   : > { %1791 = shalt.err (!%p1788_p10)
}
 0x29d   : > { %1406 = dma.vmem_to_hbm [thread:$0]  (%p2185_p0), %s2109_s25, 384, %s2107_s23, %s1124_s11  }
 0x29e PF: > { %p1443_p13 = scmp.ge.s32.totalorder %s1842_s30, 2  ;;  %s1150_s9 = sand.u32 1, %s1830_s27  }
 0x29f   : > { %p2186_p5 = scmp.ne.s32.totalorder %s2174_s21, 0  ;;  %s1151_s13 = scalar_lea.sflag [#allocation6], %s1150_s9 }
 0x2a1   : > { %p1429_p9 = pnand %p1443_p13, %p2186_p5 }
 0x2a3   : > { %p1430_p11 = pneg %p1429_p9 }
 0x2a5   : > { %1825 = dma.done.wait (%p1430_p11), %s1151_s13, 384  }
 0x2a6   : > { %1827 = vsyncadd (%p1430_p11), %s1151_s13, 4294966912  ;;  %p24_p1 = scmp.ge.s32.totalorder %s2005_s10, 18   ;;  %s2187_s27 = smov %s1834_s28 }
 0x2a7   : > { %s2188_s28 = smov %s1838_s29  ;;  %s2189_s29 = smov %s2017_s16 }
 0x2a8   : > { %s2190_s30 = smov %s2005_s10  ;;  %26 = sbr.rel (!%p24_p1) target bundleno = 12 (0xc), region = 121 }
 0x2ad   :  { %1156 = vsyncpa [#allocation5], 1 }
 0x2ae   :  { %1158 = vsyncpa [#allocation5 + $0x1], 1 }
 0x2af   :  { %1159 = vsyncpa [#allocation8], 1 }
 0x2b0   :  { %1160 = vsyncpa [#allocation11], 1 }
 0x2b1   :  { %1161 = vsyncpa [#allocation14], 1 }
 0x2b2   :  { %1162 = vsyncpa [#allocation6], 1 }
 0x2b3   :  { %1164 = vsyncpa [#allocation6 + $0x1], 1 }

</bundles_post_ra>
